<compile_context>
chip_gen: v7x
topology: tpu7x:2x2x1
jax: 0.10.0
libtpu: 0.0.40
codegen_flags: <defaults>
</compile_context>

<pallas_src>
import functools

import jax
import jax.numpy as jnp
from jax.experimental import pallas as pl
from jax.experimental.pallas import tpu as pltpu


def _round_up(x, m):
    return ((x + m - 1) // m) * m


def _mf_kernel(uid_ref, iid_ref, utab_t_ref, itab_t_ref, out_ref):
    # uid_ref / iid_ref : (1, tb) int32 VMEM  — this tile's ids (batch on lanes)
    # utab_t_ref        : (d_pad, nu_pad) f32 VMEM — transposed user table
    # itab_t_ref        : (d_pad, ni_pad) f32 VMEM — transposed item table
    # out_ref           : (1, tb) f32 — lane-dense per-row dot products
    nu_pad = utab_t_ref.shape[1]
    ni_pad = itab_t_ref.shape[1]
    tb = out_ref.shape[1]

    uids = uid_ref[...]                                     # (1, tb) int32
    iids = iid_ref[...]

    # One-hot gather through the MXU, directly in transposed (d_pad, tb)
    # layout: onehot[r, c] = (r == id[c]); table_t @ onehot selects rows.
    u_onehot = (jax.lax.broadcasted_iota(jnp.int32, (nu_pad, tb), 0)
                == uids).astype(jnp.float32)                # (nu_pad, tb)  VPU
    i_onehot = (jax.lax.broadcasted_iota(jnp.int32, (ni_pad, tb), 0)
                == iids).astype(jnp.float32)                # (ni_pad, tb)

    u_rows = jnp.dot(utab_t_ref[...], u_onehot,
                     preferred_element_type=jnp.float32)    # (d_pad, tb)   MXU
    i_rows = jnp.dot(itab_t_ref[...], i_onehot,
                     preferred_element_type=jnp.float32)    # (d_pad, tb)   MXU

    prod = u_rows * i_rows                                  # (d_pad, tb)   VPU
    # Sublane reduction -> lane-dense (1, tb) unmasked store.
    out_ref[...] = jnp.sum(prod, axis=0, keepdims=True)


def prepare_embedding_tables(user_table, item_table):
    """Pad + transpose the embedding tables once at parameter-setup time.

    Returns f32 tables of shape (d_pad, n_pad): embedding dim on sublanes
    (padded to a multiple of 8), entity ids on lanes (padded to a multiple of
    128).  Zero padding never changes the dot product.
    """
    nu, d = user_table.shape
    ni, d2 = item_table.shape
    assert d == d2, "user/item embedding dims must match"
    d_pad = _round_up(d, 8)
    nu_pad = _round_up(nu, 128)
    ni_pad = _round_up(ni, 128)
    utab_t = jnp.zeros((d_pad, nu_pad), jnp.float32).at[:d, :nu].set(
        user_table.astype(jnp.float32).T)
    itab_t = jnp.zeros((d_pad, ni_pad), jnp.float32).at[:d, :ni].set(
        item_table.astype(jnp.float32).T)
    return utab_t, itab_t


@functools.partial(jax.jit, static_argnames=("tb",))
def matrix_factorization_forward(user, item, utab_t, itab_t, *, tb=256):
    """Equivalent of MatrixFactorizationModel.forward(user, item) -> (B,) f32.

    utab_t / itab_t come from prepare_embedding_tables (called once).
    tb: batch tile (multiple of 128). Keep num_tiles >= 2 on v7x; raise tb for
    large B on single-TC chips (v5e/v6e) to amortize per-step overhead.
    """
    B = user.shape[0]
    d_pad, nu_pad = utab_t.shape
    d_pad2, ni_pad = itab_t.shape
    assert d_pad == d_pad2

    num_tiles = (B + tb - 1) // tb
    b_pad = num_tiles * tb

    # Ids as lane-dense (1, b_pad) int32 (padding ids are 0 -> harmless rows,
    # padded output lanes are sliced off below).
    uid = jnp.zeros((1, b_pad), jnp.int32).at[0, :B].set(user.astype(jnp.int32))
    iid = jnp.zeros((1, b_pad), jnp.int32).at[0, :B].set(item.astype(jnp.int32))

    # VMEM budget: tables (x2 conservative for pipeline buffering), id/out
    # blocks (x2 double buffering), in-kernel one-hot + gathered intermediates,
    # plus headroom.  Oversize tables should switch to the HBM/DMA path
    # instead of being silently clamped.
    table_bytes = (utab_t.size + itab_t.size) * 4
    block_bytes = 2 * (2 * tb * 4 + tb * 4)                  # uid, iid, out blocks
    interm_bytes = ((nu_pad + ni_pad) * tb + 4 * d_pad * tb) * 4
    vmem_need = 2 * table_bytes + block_bytes + interm_bytes
    vmem_limit = int(max(vmem_need + (2 << 20), 16 << 20))
    if vmem_limit > (64 << 20):
        # TODO(synk): HBM-resident tables + double-buffered DMA row-block gather.
        raise NotImplementedError(
            "embedding tables too large for the VMEM-resident gather path")

    out = pl.pallas_call(
        _mf_kernel,
        out_shape=jax.ShapeDtypeStruct((1, b_pad), jnp.float32),
        grid=(num_tiles,),
        in_specs=[
            pl.BlockSpec((1, tb), lambda t: (0, t)),           # user ids
            pl.BlockSpec((1, tb), lambda t: (0, t)),           # item ids
            pl.BlockSpec((d_pad, nu_pad), lambda t: (0, 0)),   # user table (resident)
            pl.BlockSpec((d_pad, ni_pad), lambda t: (0, 0)),   # item table (resident)
        ],
        out_specs=pl.BlockSpec((1, tb), lambda t: (0, t)),
        compiler_params=pltpu.CompilerParams(
            dimension_semantics=("parallel",),                 # batch tiles across cores
            vmem_limit_bytes=vmem_limit,
        ),
    )(uid, iid, utab_t, itab_t)

    return out[0, :B]


if __name__ == "__main__":
    # Deterministic small example (nn.Embedding default init: N(0, 1)).
    num_users, num_items, embedding_dim = 37, 29, 10
    batch = 500   # not a multiple of the tile -> exercises padding; 2 grid tiles

    key = jax.random.PRNGKey(0)
    k_u, k_i, k_uid, k_iid = jax.random.split(key, 4)
    user_table = jax.random.normal(k_u, (num_users, embedding_dim), dtype=jnp.float32)
    item_table = jax.random.normal(k_i, (num_items, embedding_dim), dtype=jnp.float32)

    user = jax.random.randint(k_uid, (batch,), 0, num_users, dtype=jnp.int32)
    item = jax.random.randint(k_iid, (batch,), 0, num_items, dtype=jnp.int32)

    utab_t, itab_t = prepare_embedding_tables(user_table, item_table)
    out = matrix_factorization_forward(user, item, utab_t, itab_t)
    out = jax.block_until_ready(out)

    # Pure-JAX reference for correctness.
    ref = jnp.sum(user_table[user] * item_table[item], axis=1)
    assert out.shape == (batch,)
    assert jnp.allclose(out, ref, atol=1e-5, rtol=1e-5), (out, ref)

    print("KERNEL_OK")
</pallas_src>

<mosaic_0001>
module attributes {stable_mosaic.version = 11 : i64} {
  func.func @_mf_kernel(%arg0: i32, %arg1: memref<1x256xi32, #tpu.memory_space<vmem>>, %arg2: memref<1x256xi32, #tpu.memory_space<vmem>>, %arg3: memref<16x128xf32, #tpu.memory_space<vmem>>, %arg4: memref<16x128xf32, #tpu.memory_space<vmem>>, %arg5: memref<1x256xf32, #tpu.memory_space<vmem>>) attributes {dimension_semantics = [#tpu.dimension_semantics<parallel>], iteration_bounds = array<i64: 2>, scalar_prefetch = 0 : i64, scratch_operands = 0 : i64, tpu.core_type = #tpu.core_type<tc>, window_params = [{transform_indices = @transform_0, window_bounds = array<i64: 1, 256>}, {transform_indices = @transform_1, window_bounds = array<i64: 1, 256>}, {pipeline_mode = #tpu.pipeline_mode<synchronous>, transform_indices = @transform_2, window_bounds = array<i64: 16, 128>}, {pipeline_mode = #tpu.pipeline_mode<synchronous>, transform_indices = @transform_3, window_bounds = array<i64: 16, 128>}, {transform_indices = @transform_4, window_bounds = array<i64: 1, 256>}]} {
    %c0 = arith.constant 0 : index
    %c0_0 = arith.constant 0 : index
    %0 = vector.load %arg1[%c0, %c0_0] : memref<1x256xi32, #tpu.memory_space<vmem>>, vector<1x256xi32>
    %c0_1 = arith.constant 0 : index
    %c0_2 = arith.constant 0 : index
    %1 = vector.load %arg2[%c0_1, %c0_2] : memref<1x256xi32, #tpu.memory_space<vmem>>, vector<1x256xi32>
    %2 = tpu.iota {dimensions = array<i32: 0>} : vector<128x256xi32>
    %3 = vector.broadcast %0 : vector<1x256xi32> to vector<128x256xi32>
    %4 = arith.cmpi eq, %2, %3 : vector<128x256xi32>
    %5 = arith.extui %4 : vector<128x256xi1> to vector<128x256xi32>
    %6 = arith.sitofp %5 : vector<128x256xi32> to vector<128x256xf32>
    %7 = tpu.iota {dimensions = array<i32: 0>} : vector<128x256xi32>
    %8 = vector.broadcast %1 : vector<1x256xi32> to vector<128x256xi32>
    %9 = arith.cmpi eq, %7, %8 : vector<128x256xi32>
    %10 = arith.extui %9 : vector<128x256xi1> to vector<128x256xi32>
    %11 = arith.sitofp %10 : vector<128x256xi32> to vector<128x256xf32>
    %c0_3 = arith.constant 0 : index
    %c0_4 = arith.constant 0 : index
    %12 = vector.load %arg3[%c0_3, %c0_4] : memref<16x128xf32, #tpu.memory_space<vmem>>, vector<16x128xf32>
    %cst = arith.constant dense<0.000000e+00> : vector<16x256xf32>
    %13 = tpu.matmul %12, %6, %cst {dimension_numbers = #tpu.dot_dimension_numbers<[1], [0], [0], [1], [0, 0, 1, 1], [], []>} : vector<16x128xf32>, vector<128x256xf32>, vector<16x256xf32> -> vector<16x256xf32>
    %c0_5 = arith.constant 0 : index
    %c0_6 = arith.constant 0 : index
    %14 = vector.load %arg4[%c0_5, %c0_6] : memref<16x128xf32, #tpu.memory_space<vmem>>, vector<16x128xf32>
    %cst_7 = arith.constant dense<0.000000e+00> : vector<16x256xf32>
    %15 = tpu.matmul %14, %11, %cst_7 {dimension_numbers = #tpu.dot_dimension_numbers<[1], [0], [0], [1], [0, 0, 1, 1], [], []>} : vector<16x128xf32>, vector<128x256xf32>, vector<16x256xf32> -> vector<16x256xf32>
    %16 = arith.mulf %13, %15 : vector<16x256xf32>
    %cst_8 = arith.constant dense<0.000000e+00> : vector<256xf32>
    %17 = vector.multi_reduction <add>, %16, %cst_8 [0] : vector<16x256xf32> to vector<256xf32>
    %18 = vector.shape_cast %17 : vector<256xf32> to vector<1x256xf32>
    %c0_9 = arith.constant 0 : index
    %c0_10 = arith.constant 0 : index
    %19 = vector.load %arg5[%c0_9, %c0_10] : memref<1x256xf32, #tpu.memory_space<vmem>>, vector<1x256xf32>
    tpu.vector_store %arg5[%c0_9, %c0_10], %18 {strides = array<i32>} : memref<1x256xf32, #tpu.memory_space<vmem>>, vector<1x256xf32>,
    return
  }
  func.func @transform_0(%arg0: i32) -> (i32, i32) {
    %c0_i32 = arith.constant 0 : i32
    %c0_i32_0 = arith.constant 0 : i32
    return %c0_i32, %arg0 : i32, i32
  }
  func.func @transform_1(%arg0: i32) -> (i32, i32) {
    %c0_i32 = arith.constant 0 : i32
    %c0_i32_0 = arith.constant 0 : i32
    return %c0_i32, %arg0 : i32, i32
  }
  func.func @transform_2(%arg0: i32) -> (i32, i32) {
    %c0_i32 = arith.constant 0 : i32
    %c0_i32_0 = arith.constant 0 : i32
    %c0_i32_1 = arith.constant 0 : i32
    return %c0_i32, %c0_i32_0 : i32, i32
  }
  func.func @transform_3(%arg0: i32) -> (i32, i32) {
    %c0_i32 = arith.constant 0 : i32
    %c0_i32_0 = arith.constant 0 : i32
    %c0_i32_1 = arith.constant 0 : i32
    return %c0_i32, %c0_i32_0 : i32, i32
  }
  func.func @transform_4(%arg0: i32) -> (i32, i32) {
    %c0_i32 = arith.constant 0 : i32
    %c0_i32_0 = arith.constant 0 : i32
    return %c0_i32, %arg0 : i32, i32
  }
}

</mosaic_0001>

<bundles_post_ra>
// kernel: matrix_factorization_forward.1
= control target key start
LH: loop header
LB: loop body
LE: loop exit
PB: predicated region body
PF: predicated region fallthrough
CT: control target
= control target key end

     0   :  { %9 = vsyncpa [#allocation3], 0  ;;  %s1309_s0 = inlined_call_operand.vmem [shape: s32[1,512], index: 0, kind: input, shape index: {}]   ;;  %s1310_s1 = inlined_call_operand.vmem [shape: s32[1,512], index: 1, kind: input, shape index: {}]   ;;  %s1311_s2 = inlined_call_operand.vmem [shape: f32[16,128], index: 2, kind: input, shape index: {}]   ;;  %s1312_s3 = inlined_call_operand.vmem [shape: f32[16,128], index: 3, kind: input, shape index: {}]   ;;  %s1313_s4 = inlined_call_operand.hbm [shape: f32[1,512], index: 4, kind: output, shape index: {}]  }
   0x1   :  { %11 = vsyncpa [#allocation3 + $0x1], 0  ;;  %s1061_s15 = smov 0   ;;  %s1063_s16 = smov 0  }
   0x2   :  { %s1065_s17 = smov 0   ;;  %s1067_s18 = smov 0  }
   0x3 LB: > { %s1082_s19 = sadd.s32 4294967295, %s1030_s18   ;;  %s721_s20 = sadd.s32 4294967294, %s1030_s18   ;;  %s1030_s18 = sphi %s1067_s18, %s1319_s18   ;;  %s1026_s17 = sphi %s1065_s17, %s1318_s17   ;;  %s1022_s16 = sphi %s1063_s16, %s1317_s16   ;;  %s1018_s15 = sphi %s1061_s15, %s1316_s15  }
   0x4   : > { %s1086_s21 = sadd.s32 1, %s1030_s18   ;;  %s118_s22 = sadd.s32 1, %s1026_s17 }
   0x5   : > { %s115_s23 = ssub.s32 %s1030_s18, %s1086_s21  ;;  %p128_p0 = scmp.ne.s32.totalorder %s1026_s17, %s1022_s16 }
   0x6   : > { %p116_p1 = scmp.eq.s32.totalorder %s115_s23, 0  ;;  %p129_p2 = scmp.eq.s32.totalorder %s1082_s19, 1 }
   0x7   : > { %p134_p3 = scmp.ne.s32.totalorder %s1022_s16, %s1018_s15  ;;  %p135_p4 = scmp.eq.s32.totalorder %s721_s20, 1 }
   0x8   : > { %s1097_s24 = scalar_select %p116_p1, %s1026_s17, %s118_s22  }
   0x9   : > { %p1099_p5 = por %p129_p2, %p128_p0  ;;  %p1103_p6 = por %p135_p4, %p134_p3 }
   0xa   : > { %p724_p7 = scmp.ge.s32.totalorder %s1030_s18, 1  ;;  %p175_p8 = scmp.lt.s32.totalorder %s1030_s18, 3 }
   0xc   : > { %p176_p9 = pnand %p724_p7, %p175_p8 }
   0xd   : > { %s726_s27 = sshll.u32 (!%p176_p9), %s1082_s19, 1  ;;  %v217_v0 = vlaneseq (!%p176_p9)  ;;  %v1032_v1 = vmov (!%p176_p9), 0.0   ;;  %v1033_v14 = vmov (!%p176_p9), 1.0|1.0   ;;  %v442_v27 = vld [vmem:[%s1311_s2] sm:$0xff] (!%p176_p9)  ;;  %v443_v29 = vld [vmem:[%s1311_s2 + $0x8] sm:$0xff] (!%p176_p9) }
   0xe   : > { %179 = sbr.rel (%p176_p9) target bundleno = 315 (0x13b), region = 36  ;;  %p205_p10 = scmp.lt.s32.totalorder (!%p176_p9), %s726_s27, 3  ;;  %508 = vmatprep.mubr.f32.mxu0 (!%p176_p9), %v1032_v1  ;;  %587 = vmatprep.mubr.f32.mxu1 (!%p176_p9), %v1032_v1  ;;  %v521_v28 = vld [vmem:[%s1312_s3] sm:$0xff] (!%p176_p9)  ;;  %v522_v30 = vld [vmem:[%s1312_s3 + $0x8] sm:$0xff] (!%p176_p9)  ;;  %v1034_v49 = vmov (!%p176_p9), 1966171168  }
   0xf   : > { %v1113_v2 = vshrl.u32 (!%p176_p9), %v217_v0, 7  ;;  %v622_v50 = vunpack.c.l.s4 (!%p176_p9), %v1034_v49  ;;  %s201_s22 = sand.u32 (!%p176_p9), 1, %s1022_s16  }
  0x10   : > { %s725_s23 = sshll.u32 (!%p176_p9), %s201_s22, 1 }
  0x11   : > { %v240_v3 = vsub.s32 (!%p176_p9), 1, %v1113_v2  ;;  %v236_v4 = vsub.s32 (!%p176_p9), 0, %v1113_v2  ;;  %v219_v5 = vadd.s32 (!%p176_p9), 8, %v1113_v2  ;;  %v220_v8 = vadd.s32 (!%p176_p9), 16, %v1113_v2  ;;  %s203_s28 = scalar_lea.vmem (!%p176_p9), [#allocation2], %s725_s23 }
  0x12   : > { %v221_v9 = vadd.s32 (!%p176_p9), 24, %v1113_v2  ;;  %v222_v15 = vadd.s32 (!%p176_p9), 32, %v1113_v2  ;;  %v223_v16 = vadd.s32 (!%p176_p9), 40, %v1113_v2  ;;  %v224_v17 = vadd.s32 (!%p176_p9), 48, %v1113_v2  ;;  %s656_s29 = sshll.u32 (!%p176_p9), %s203_s28, 4  ;;  %s1269_s29 = int_to_ptr.vmem [resolvable:$true] %s656_s29 }
  0x13   : > { %v225_v18 = vadd.s32 (!%p176_p9), 56, %v1113_v2  ;;  %v226_v19 = vadd.s32 (!%p176_p9), 64, %v1113_v2  ;;  %v227_v20 = vadd.s32 (!%p176_p9), 72, %v1113_v2  ;;  %v228_v21 = vadd.s32 (!%p176_p9), 80, %v1113_v2  ;;  %s968_s8 = scalar_lea.vmem (!%p176_p9), %s1269_s29, 32 }
  0x14   : > { %v229_v22 = vadd.s32 (!%p176_p9), 88, %v1113_v2  ;;  %v230_v23 = vadd.s32 (!%p176_p9), 96, %v1113_v2  ;;  %v231_v24 = vadd.s32 (!%p176_p9), 104, %v1113_v2  ;;  %v232_v25 = vadd.s32 (!%p176_p9), 112, %v1113_v2  ;;  %p969_p11 = scmp.ne.s32.totalorder (!%p176_p9), %s1269_s29, %s968_s8 }
  0x15   : > { %s1321_s27 = smov (!%p205_p10, %s726_s27), 3  ;;  %v233_v26 = vadd.s32 120, %v1113_v2  ;;  %v623_v55 = vunpack.c.0.s8 %v622_v50 }
  0x16   : > { %s207_s30 = scalar_lea.vmem %s1309_s0, %s1321_s27  ;;  %s212_s7 = scalar_lea.vmem %s1310_s1, %s1321_s27 }
  0x17   : > { %v215_v6 = vld [vmem:[%s207_s30] sm:$0x3]  ;;  %v626_v60 = vsub.s32 %v623_v55, %v1113_v2  ;;  %s861_s27 = sshll.u32 %s1082_s19, 5  ;;  %p970_p12 = pnand %p969_p11, %p1099_p5 }
  0x18   : > { %v216_v7 = vld [vmem:[%s212_s7] sm:$0x3]  ;;  %v1126_v10 = vrot.slane %v215_v6, %v240_v3  ;;  %v1130_v12 = vrot.slane %v215_v6, %v236_v4  ;;  %s1267_s6 = scalar_lea.hbm %s1313_s4, %s861_s27  ;;  %s642_s7 = scalar_lea.sflag [#allocation3], %s201_s22 }
  0x19   : > { %v1128_v11 = vrot.slane %v216_v7, %v240_v3  ;;  %v1132_v13 = vrot.slane %v216_v7, %v236_v4  ;;  %p971_p13 = pneg %p970_p12  ;;  %s1035_s19 = smov [#allocation2]  }
  0x1a   : > { %vm243_vm0 = vcmp.eq.s32.totalorder %v1113_v2, %v1126_v10  ;;  %vm245_vm1 = vcmp.eq.s32.totalorder %v219_v5, %v1126_v10  ;;  %vm242_vm5 = vcmp.eq.s32.totalorder %v1113_v2, %v1130_v12  ;;  %vm244_vm6 = vcmp.eq.s32.totalorder %v219_v5, %v1130_v12  ;;  %s972_s9 = sshll.u32 %s1035_s19, 4  ;;  %s973_s9 = int_to_ptr.vmem [resolvable:$false] %s972_s9 }
  0x1b   : > { %vm347_vm2 = vcmp.eq.s32.totalorder %v1113_v2, %v1128_v11  ;;  %vm349_vm3 = vcmp.eq.s32.totalorder %v219_v5, %v1128_v11  ;;  %vm862_vm4 = vmpackc.low %vm245_vm1, %vm243_vm0  ;;  %vm346_vm7 = vcmp.eq.s32.totalorder %v1113_v2, %v1132_v13  ;;  %vm348_vm8 = vcmp.eq.s32.totalorder %v219_v5, %v1132_v13  ;;  %s974_s10 = scalar_lea.vmem %s973_s9, 64  ;;  %p975_p0 = scmp.lt.s32.totalorder %s1269_s29, %s973_s9 }
  0x1c   : > { %863 = vmatprep.subr.msk.bf16.mxu0 %vm862_vm4, %v1033_v14  ;;  %vm894_vm9 = vmpackc.low %vm349_vm3, %vm347_vm2  ;;  %vm247_vm10 = vcmp.eq.s32.totalorder %v220_v8, %v1126_v10  ;;  %vm249_vm11 = vcmp.eq.s32.totalorder %v221_v9, %v1126_v10  ;;  %vm351_vm13 = vcmp.eq.s32.totalorder %v220_v8, %v1128_v11  ;;  %vm353_vm14 = vcmp.eq.s32.totalorder %v221_v9, %v1128_v11  ;;  %p976_p1 = scmp.lt.s32.totalorder %s974_s10, %s968_s8 }
  0x1d   : > { %895 = vmatprep.subr.msk.bf16.mxu1 %vm894_vm9, %v1033_v14  ;;  %vm864_vm12 = vmpackc.low %vm244_vm6, %vm242_vm5  ;;  %vm246_vm0 = vcmp.eq.s32.totalorder %v220_v8, %v1130_v12  ;;  %vm248_vm1 = vcmp.eq.s32.totalorder %v221_v9, %v1130_v12  ;;  %vm350_vm3 = vcmp.eq.s32.totalorder %v220_v8, %v1132_v13  ;;  %vm352_vm4 = vcmp.eq.s32.totalorder %v221_v9, %v1132_v13 }
  0x1e   : > { %865 = vmatpush1.bf16.msk.msra.mxu0 %vm864_vm12, %v1033_v14  ;;  %vm896_vm15 = vmpackc.low %vm348_vm8, %vm346_vm7  ;;  %vm251_vm6 = vcmp.eq.s32.totalorder %v222_v15, %v1126_v10  ;;  %vm253_vm9 = vcmp.eq.s32.totalorder %v223_v16, %v1126_v10  ;;  %vm355_vm8 = vcmp.eq.s32.totalorder %v222_v15, %v1128_v11  ;;  %vm250_vm12 = vcmp.eq.s32.totalorder %v222_v15, %v1130_v12  ;;  %p977_p2 = por %p976_p1, %p975_p0 }
  0x1f   : > { %897 = vmatpush1.bf16.msk.msra.mxu1 %vm896_vm15, %v1033_v14  ;;  %vm866_vm2 = vmpackc.low %vm249_vm11, %vm247_vm10  ;;  %vm357_vm10 = vcmp.eq.s32.totalorder %v223_v16, %v1128_v11  ;;  %vm354_vm15 = vcmp.eq.s32.totalorder %v222_v15, %v1132_v13 }
  0x20   : > { %867 = vmatprep.subr.msk.bf16.mxu0 %vm866_vm2, %v1033_v14  ;;  %vm898_vm5 = vmpackc.low %vm353_vm14, %vm351_vm13  ;;  %vm252_vm13 = vcmp.eq.s32.totalorder %v223_v16, %v1130_v12  ;;  %vm356_vm2 = vcmp.eq.s32.totalorder %v223_v16, %v1132_v13  ;;  %p978_p3 = pnand %p977_p2, %p971_p13 }
  0x21   : > { %899 = vmatprep.subr.msk.bf16.mxu1 %vm898_vm5, %v1033_v14  ;;  %vm868_vm7 = vmpackc.low %vm248_vm1, %vm246_vm0  ;;  %vm255_vm1 = vcmp.eq.s32.totalorder %v224_v17, %v1126_v10  ;;  %vm257_vm5 = vcmp.eq.s32.totalorder %v225_v18, %v1126_v10 }
  0x22   : > { %869 = vmatpush1.bf16.msk.msra.mxu0 %vm868_vm7, %v1033_v14  ;;  %vm900_vm11 = vmpackc.low %vm352_vm4, %vm350_vm3  ;;  %vm359_vm4 = vcmp.eq.s32.totalorder %v224_v17, %v1128_v11  ;;  %vm254_vm7 = vcmp.eq.s32.totalorder %v224_v17, %v1130_v12 }
  0x23   : > { %901 = vmatpush1.bf16.msk.msra.mxu1 %vm900_vm11, %v1033_v14  ;;  %vm870_vm14 = vmpackc.low %vm253_vm9, %vm251_vm6  ;;  %vm361_vm6 = vcmp.eq.s32.totalorder %v225_v18, %v1128_v11  ;;  %vm358_vm11 = vcmp.eq.s32.totalorder %v224_v17, %v1132_v13 }
  0x24   : > { %871 = vmatprep.subr.msk.bf16.mxu0 %vm870_vm14, %v1033_v14  ;;  %vm902_vm0 = vmpackc.low %vm357_vm10, %vm355_vm8  ;;  %vm256_vm8 = vcmp.eq.s32.totalorder %v225_v18, %v1130_v12  ;;  %vm360_vm14 = vcmp.eq.s32.totalorder %v225_v18, %v1132_v13 }
  0x25   : > { %903 = vmatprep.subr.msk.bf16.mxu1 %vm902_vm0, %v1033_v14  ;;  %vm872_vm3 = vmpackc.low %vm252_vm13, %vm250_vm12  ;;  %vm259_vm13 = vcmp.eq.s32.totalorder %v226_v19, %v1126_v10  ;;  %vm261_vm0 = vcmp.eq.s32.totalorder %v227_v20, %v1126_v10 }
  0x26   : > { %873 = vmatpush1.bf16.msk.msra.mxu0 %vm872_vm3, %v1033_v14  ;;  %vm904_vm9 = vmpackc.low %vm356_vm2, %vm354_vm15  ;;  %vm363_vm2 = vcmp.eq.s32.totalorder %v226_v19, %v1128_v11  ;;  %vm258_vm3 = vcmp.eq.s32.totalorder %v226_v19, %v1130_v12 }
  0x27   : > { %905 = vmatpush1.bf16.msk.msra.mxu1 %vm904_vm9, %v1033_v14  ;;  %vm874_vm10 = vmpackc.low %vm257_vm5, %vm255_vm1  ;;  %vm365_vm1 = vcmp.eq.s32.totalorder %v227_v20, %v1128_v11  ;;  %vm362_vm9 = vcmp.eq.s32.totalorder %v226_v19, %v1132_v13 }
  0x28   : > { %875 = vmatprep.subr.msk.bf16.mxu0 %vm874_vm10, %v1033_v14  ;;  %vm906_vm12 = vmpackc.low %vm361_vm6, %vm359_vm4  ;;  %vm260_vm4 = vcmp.eq.s32.totalorder %v227_v20, %v1130_v12  ;;  %vm364_vm10 = vcmp.eq.s32.totalorder %v227_v20, %v1132_v13 }
  0x29   : > { %907 = vmatprep.subr.msk.bf16.mxu1 %vm906_vm12, %v1033_v14  ;;  %vm876_vm15 = vmpackc.low %vm256_vm8, %vm254_vm7  ;;  %vm263_vm8 = vcmp.eq.s32.totalorder %v228_v21, %v1126_v10  ;;  %vm265_vm12 = vcmp.eq.s32.totalorder %v229_v22, %v1126_v10 }
  0x2a   : > { %877 = vmatpush1.bf16.msk.msra.mxu0 %vm876_vm15, %v1033_v14  ;;  %vm908_vm5 = vmpackc.low %vm360_vm14, %vm358_vm11  ;;  %vm367_vm14 = vcmp.eq.s32.totalorder %v228_v21, %v1128_v11  ;;  %vm262_vm15 = vcmp.eq.s32.totalorder %v228_v21, %v1130_v12 }
  0x2b   : > { %909 = vmatpush1.bf16.msk.msra.mxu1 %vm908_vm5, %v1033_v14  ;;  %vm878_vm6 = vmpackc.low %vm261_vm0, %vm259_vm13  ;;  %vm369_vm13 = vcmp.eq.s32.totalorder %v229_v22, %v1128_v11  ;;  %vm366_vm5 = vcmp.eq.s32.totalorder %v228_v21, %v1132_v13 }
  0x2c   : > { %879 = vmatprep.subr.msk.bf16.mxu0 %vm878_vm6, %v1033_v14  ;;  %vm910_vm7 = vmpackc.low %vm365_vm1, %vm363_vm2  ;;  %vm264_vm2 = vcmp.eq.s32.totalorder %v229_v22, %v1130_v12  ;;  %vm368_vm6 = vcmp.eq.s32.totalorder %v229_v22, %v1132_v13 }
  0x2d   : > { %911 = vmatprep.subr.msk.bf16.mxu1 %vm910_vm7, %v1033_v14  ;;  %vm880_vm11 = vmpackc.low %vm260_vm4, %vm258_vm3  ;;  %vm267_vm4 = vcmp.eq.s32.totalorder %v230_v23, %v1126_v10  ;;  %vm269_vm7 = vcmp.eq.s32.totalorder %v231_v24, %v1126_v10 }
  0x2e   : > { %881 = vmatpush1.bf16.msk.msra.mxu0 %vm880_vm11, %v1033_v14  ;;  %vm912_vm0 = vmpackc.low %vm364_vm10, %vm362_vm9  ;;  %vm371_vm10 = vcmp.eq.s32.totalorder %v230_v23, %v1128_v11  ;;  %vm266_vm11 = vcmp.eq.s32.totalorder %v230_v23, %v1130_v12 }
  0x2f   : > { %913 = vmatpush1.bf16.msk.msra.mxu1 %vm912_vm0, %v1033_v14  ;;  %vm882_vm1 = vmpackc.low %vm265_vm12, %vm263_vm8  ;;  %vm373_vm8 = vcmp.eq.s32.totalorder %v231_v24, %v1128_v11  ;;  %vm370_vm0 = vcmp.eq.s32.totalorder %v230_v23, %v1132_v13 }
  0x30   : > { %883 = vmatprep.subr.msk.bf16.mxu0 %vm882_vm1, %v1033_v14  ;;  %vm914_vm3 = vmpackc.low %vm369_vm13, %vm367_vm14  ;;  %vm268_vm14 = vcmp.eq.s32.totalorder %v231_v24, %v1130_v12  ;;  %vm372_vm1 = vcmp.eq.s32.totalorder %v231_v24, %v1132_v13 }
  0x31   : > { %915 = vmatprep.subr.msk.bf16.mxu1 %vm914_vm3, %v1033_v14  ;;  %vm884_vm9 = vmpackc.low %vm264_vm2, %vm262_vm15  ;;  %vm271_vm2 = vcmp.eq.s32.totalorder %v232_v25, %v1126_v10  ;;  %vm273_vm3 = vcmp.eq.s32.totalorder %v233_v26, %v1126_v10 }
  0x32   : > { %885 = vmatpush1.bf16.msk.msra.mxu0 %vm884_vm9, %v1033_v14  ;;  %vm916_vm12 = vmpackc.low %vm368_vm6, %vm366_vm5  ;;  %vm375_vm6 = vcmp.eq.s32.totalorder %v232_v25, %v1128_v11  ;;  %vm377_vm9 = vcmp.eq.s32.totalorder %v233_v26, %v1128_v11 }
  0x33   : > { %917 = vmatpush1.bf16.msk.msra.mxu1 %vm916_vm12, %v1033_v14  ;;  %vm886_vm13 = vmpackc.low %vm269_vm7, %vm267_vm4  ;;  %vm270_vm7 = vcmp.eq.s32.totalorder %v232_v25, %v1130_v12  ;;  %vm272_vm12 = vcmp.eq.s32.totalorder %v233_v26, %v1130_v12 }
  0x34   : > { %887 = vmatprep.subr.msk.bf16.mxu0 %vm886_vm13, %v1033_v14  ;;  %vm918_vm15 = vmpackc.low %vm373_vm8, %vm371_vm10  ;;  %vm374_vm8 = vcmp.eq.s32.totalorder %v232_v25, %v1132_v13  ;;  %vm376_vm13 = vcmp.eq.s32.totalorder %v233_v26, %v1132_v13 }
  0x35   : > { %919 = vmatprep.subr.msk.bf16.mxu1 %vm918_vm15, %v1033_v14  ;;  %vm888_vm5 = vmpackc.low %vm268_vm14, %vm266_vm11 }
  0x36   : > { %889 = vmatpush1.bf16.msk.msra.mxu0 %vm888_vm5, %v1033_v14  ;;  %vm920_vm4 = vmpackc.low %vm372_vm1, %vm370_vm0  ;;  %vm638_vm1 = vcmp.lt.s32.totalorder %v217_v0, 256 }
  0x37   : > { %921 = vmatpush1.bf16.msk.msra.mxu1 %vm920_vm4, %v1033_v14  ;;  %vm890_vm10 = vmpackc.low %vm273_vm3, %vm271_vm2 }
  0x38   : > { %891 = vmatprep.subr.msk.bf16.mxu0 %vm890_vm10, %v1033_v14  ;;  %vm922_vm11 = vmpackc.low %vm377_vm9, %vm375_vm6 }
  0x39   : > { %923 = vmatprep.subr.msk.bf16.mxu1 %vm922_vm11, %v1033_v14  ;;  %vm892_vm14 = vmpackc.low %vm272_vm12, %vm270_vm7 }
  0x3a   : > { %893 = vmatpush1.bf16.msk.msra.mxu0 %vm892_vm14, %v1033_v14  ;;  %vm924_vm0 = vmpackc.low %vm376_vm13, %vm374_vm8 }
  0x3b   : > { %925 = vmatpush1.bf16.msk.msra.mxu1 %vm924_vm0, %v1033_v14 }
  0x3d   : > { %509 = vmatmul.mubr.f32.vlgmr.msra.gmra.mrb[0].mxu0 %v442_v27 }
  0x3e   : > { %588 = vmatmul.mubr.f32.vlgmr.msra.gmra.mrb[0].mxu1 %v521_v28  ;;  %514 = vmatprep.mubr.f32.mxu0 %v1032_v1 }
  0x3f   : > { %593 = vmatprep.mubr.f32.mxu1 %v1032_v1 }
  0x41   : > { %515 = vmatmul.mubr.f32.gmra.mrb[2].mxu0 %v443_v29 }
  0x42   : > { %594 = vmatmul.mubr.f32.gmra.mrb[2].mxu1 %v522_v30 }
 0x110   : > { %v510_v31 = vpop.f32.mrb[0].mxu0 }
 0x111   : > { %v589_v32 = vpop.f32.mrb[0].mxu1  ;;  %v512_v33 = vpop.f32.mrb[1].mxu0 }
 0x112   : > { %v600_v34 = vmul.f32 %v589_v32, %v510_v31  ;;  %v591_v35 = vpop.f32.mrb[1].mxu1 }
 0x113   : > { %v601_v36 = vmul.f32 %v591_v35, %v512_v33 }
 0x114   : > { %v516_v37 = vpop.f32.mrb[2].mxu0 }
 0x115   : > { %v595_v38 = vpop.f32.mrb[2].mxu1  ;;  %v518_v39 = vpop.f32.mrb[3].mxu0 }
 0x116   : > { %v602_v40 = vmul.f32 %v595_v38, %v516_v37  ;;  %v597_v41 = vpop.f32.mrb[3].mxu1 }
 0x117   : > { %v603_v42 = vmul.f32 %v597_v41, %v518_v39 }
 0x118   : > { %v604_v43 = vadd.f32 %v602_v40, %v600_v34 }
 0x119   : > { %v611_v44 = vadd.f32 %v603_v42, %v601_v36 }
 0x11a   : > { %v605_v45 = vrot.slane %v604_v43, 4 }
 0x11b   : > { %v612_v46 = vrot.slane %v611_v44, 4 }
 0x11c   : > { %v606_v47 = vadd.f32 %v605_v45, %v604_v43 }
 0x11d   : > { %v613_v48 = vadd.f32 %v612_v46, %v611_v44 }
 0x11e   : > { %v607_v51 = vrot.slane %v606_v47, 2 }
 0x11f   : > { %v614_v52 = vrot.slane %v613_v48, 2 }
 0x120   : > { %v608_v53 = vadd.f32 %v607_v51, %v606_v47 }
 0x121   : > { %v615_v54 = vadd.f32 %v614_v52, %v613_v48 }
 0x122   : > { %v609_v56 = vrot.slane %v608_v53, 1 }
 0x123   : > { %v616_v57 = vrot.slane %v615_v54, 1 }
 0x124   : > { %v610_v58 = vadd.f32 %v609_v56, %v608_v53 }
 0x125   : > { %v617_v59 = vadd.f32 %v616_v57, %v615_v54 }
 0x127   : > { %v620_v61 = vcombine.low %v610_v58, %v617_v59 }
 0x129   : > { %v627_v62 = vrot.slane %v620_v61, %v626_v60 }
 0x12b   : > { %v634_v63 = vrot.slane %v627_v62, %v626_v60 }
 0x12d   : > { %640 = vst.msk [vmem:[%s203_s28] sm:$0x3] %vm638_vm1, %v634_v63 }
 0x12e   : > { %981 = shalt.err (!%p978_p3)
}
 0x12f   : > { %s982_s11 = scalar_lea.hbm %s1267_s6, 32  ;;  %s986_s14 = scalar_lea.hbm %s1313_s4, 64 }
 0x130   : > { %p983_p4 = scmp.ne.s32.totalorder %s1267_s6, %s982_s11  ;;  %p987_p9 = scmp.lt.u32.totalorder %s1267_s6, %s1313_s4 }
 0x131   : > { %p988_p10 = scmp.lt.u32.totalorder %s986_s14, %s982_s11  ;;  %p990_p12 = scmp.lt.u32.totalorder %s982_s11, %s1267_s6 }
 0x132   : > { %p984_p7 = pnand %p983_p4, %p1099_p5 }
 0x133   : > { %p989_p11 = por %p988_p10, %p987_p9 }
 0x134   : > { %p985_p8 = pneg %p984_p7 }
 0x135   : > { %p991_p13 = por %p990_p12, %p989_p11 }
 0x137   : > { %p992_p0 = pnand %p991_p13, %p985_p8 }
 0x139   : > { %995 = shalt.err (!%p992_p0)
}
 0x13a   : > { %926 = dma.vmem_to_hbm [thread:$0]  (%p1099_p5), %s1269_s29, 32, %s1267_s6, %s642_s7  }
 0x13b PF: > { %p932_p1 = scmp.ge.s32.totalorder %s1030_s18, 2  ;;  %s668_s23 = sand.u32 1, %s1018_s15  }
 0x13c   : > { %s669_s27 = scalar_lea.sflag [#allocation3], %s668_s23 }
 0x13d   : > { %p929_p2 = pnand %p932_p1, %p1103_p6 }
 0x13f   : > { %1013 = dma.done.wait (!%p929_p2), %s669_s27, 32  }
 0x140   : > { %1015 = vsyncadd (!%p929_p2), %s669_s27, 4294967264  ;;  %p14_p3 = scmp.ge.s32.totalorder %s1086_s21, 4   ;;  %s1316_s15 = smov %s1022_s16 }
 0x141   : > { %s1317_s16 = smov %s1026_s17  ;;  %s1318_s17 = smov %s1097_s24 }
 0x142   : > { %s1319_s18 = smov %s1086_s21  ;;  %16 = sbr.rel (!%p14_p3) target bundleno = 3 (0x3), region = 74 }
 0x149   :  { %674 = vsyncpa [#allocation3], 1 }
 0x14a   :  { %676 = vsyncpa [#allocation3 + $0x1], 1 }

</bundles_post_ra>
